<compile_context>
chip_gen: v7x
topology: tpu7x:2x2x1
jax: 0.10.0
libtpu: 0.0.40
codegen_flags: <defaults>
</compile_context>

<pallas_src>
import functools

import jax
import jax.numpy as jnp
from jax.experimental import pallas as pl
from jax.experimental.pallas import tpu as pltpu


def _round_up(x, m):
    return (x + m - 1) // m * m


def _largest_tile(total, max_tile, multiple=128):
    """Largest divisor of `total` that is a multiple of `multiple` and <= max_tile.

    `total` must itself be a multiple of `multiple`.
    """
    q = total // multiple
    best = 1
    d = 1
    while d * d <= q:
        if q % d == 0:
            for c in (d, q // d):
                if c * multiple <= max_tile:
                    best = max(best, c)
        d += 1
    return best * multiple


# ---------------------------------------------------------------------------
# Kernels
# ---------------------------------------------------------------------------
def _linear_bias_kernel(x_ref, w_ref, b_ref, o_ref):
    """Single-shot tile: out = x @ w + b (no accumulator scratch needed)."""
    o_ref[...] = (
        jnp.dot(x_ref[...], w_ref[...], preferred_element_type=jnp.float32)
        + b_ref[...].astype(jnp.float32)
    ).astype(o_ref.dtype)


def _linear_acc_kernel(x_ref, w_ref, b_ref, o_ref, acc_ref):
    """Output-stationary tile accumulated over the K grid axis.

    The f32 accumulator is initialized with the bias at k == 0 (saves the
    epilogue VPU add and the zero-init pass) and stored once at the last step.
    """
    k = pl.program_id(2)

    @pl.when(k == 0)
    def _():
        acc_ref[...] = jnp.broadcast_to(
            b_ref[...].astype(jnp.float32), acc_ref.shape
        )

    acc_ref[...] += jnp.dot(
        x_ref[...], w_ref[...], preferred_element_type=jnp.float32
    )

    @pl.when(k == pl.num_programs(2) - 1)
    def _():
        o_ref[...] = acc_ref[...].astype(o_ref.dtype)


def _weight_block_spec(tk, tn, deep_buffer):
    """Weight tile spec; optionally triple-buffered for GEMV-like shapes."""
    idx = lambda i, j, k: (k, j)
    if deep_buffer and hasattr(pl, "Buffered"):
        try:
            return pl.BlockSpec((tk, tn), idx, pipeline_mode=pl.Buffered(3))
        except TypeError:
            # Older API without pipeline_mode -- fall back to default buffering.
            pass
    return pl.BlockSpec((tk, tn), idx)


# ---------------------------------------------------------------------------
# Parameter prep (one-time, outside the jitted forward)
# ---------------------------------------------------------------------------
def prepare_params(weight, bias, compute_dtype=None):
    """weight: (N, K) in torch.nn.Linear convention; bias: (N,).

    Pre-transposes the weight to (K, N) and zero-pads both operands to
    lane-dense shapes (multiples of 128) ONCE.  `compute_dtype=jnp.bfloat16`
    enables the MXU-native bf16 path (f32 accumulation is kept in-kernel);
    default keeps the weight dtype (f32 fallback for accuracy).

    Returns (w_t_padded (K_pad, N_pad), bias2d (1, N_pad) f32, n_out, k_in).
    """
    N, K = weight.shape
    K_pad = _round_up(K, 128)
    N_pad = _round_up(N, 128)
    w_dtype = compute_dtype if compute_dtype is not None else weight.dtype
    w_t = (
        jnp.zeros((K_pad, N_pad), w_dtype)
        .at[:K, :N]
        .set(weight.T.astype(w_dtype))
    )
    b2d = jnp.zeros((1, N_pad), jnp.float32).at[0, :N].set(bias.astype(jnp.float32))
    return w_t, b2d, int(N), int(K)


# Whole (padded) weight + bias small enough to hold resident in VMEM as a
# single block -> skip the 3-D grid entirely.
_FAST_PATH_WEIGHT_BYTES = 2 * 1024 * 1024
_FAST_PATH_MAX_KPAD = 1024


# ---------------------------------------------------------------------------
# Forward
# ---------------------------------------------------------------------------
@functools.partial(jax.jit, static_argnames=("n_out", "k_in"))
def single_layer_forward(story, w_t, bias2d, n_out, k_in):
    """story: (B, *feature_dims); w_t: (K_pad, N_pad) pre-transposed/padded;
    bias2d: (1, N_pad) f32; n_out/k_in: true Linear out/in feature counts.
    Returns (B, n_out) in story.dtype -- matches Linear(story.view(B, -1))."""
    out_dtype = story.dtype
    B = story.shape[0]
    x = story.reshape(B, -1)                      # story.view(dim_batch, -1)
    K = x.shape[1]
    if K != k_in:
        raise ValueError(
            f"flattened feature dim {K} does not match the prepared weight "
            f"(expected {k_in})"
        )
    K_pad, N_pad = w_t.shape

    if x.dtype != w_t.dtype:
        x = x.astype(w_t.dtype)                   # e.g. bf16 compute path

    in_itemsize = jnp.dtype(w_t.dtype).itemsize
    out_itemsize = jnp.dtype(out_dtype).itemsize
    weight_bytes = K_pad * N_pad * in_itemsize

    # ------------------------------------------------------------------ #
    # Fast path: whole weight resident, grid over M only, no accumulator.
    # ------------------------------------------------------------------ #
    if weight_bytes <= _FAST_PATH_WEIGHT_BYTES and K_pad <= _FAST_PATH_MAX_KPAD:
        tm = min(_round_up(B, 8), 256)
        M_pad = _round_up(B, tm)
        if (M_pad, K_pad) != x.shape:
            x = jnp.zeros((M_pad, K_pad), x.dtype).at[:B, :K].set(x)

        cost = pl.CostEstimate(
            flops=2 * M_pad * K_pad * N_pad,
            transcendentals=0,
            bytes_accessed=(
                in_itemsize * (M_pad * K_pad + K_pad * N_pad)
                + out_itemsize * M_pad * N_pad
            ),
        )
        out = pl.pallas_call(
            _linear_bias_kernel,
            out_shape=jax.ShapeDtypeStruct((M_pad, N_pad), out_dtype),
            grid_spec=pltpu.PrefetchScalarGridSpec(
                num_scalar_prefetch=0,
                grid=(M_pad // tm,),
                in_specs=[
                    pl.BlockSpec((tm, K_pad), lambda i: (i, 0)),     # x tile
                    pl.BlockSpec((K_pad, N_pad), lambda i: (0, 0)),  # resident W
                    pl.BlockSpec((1, N_pad), lambda i: (0, 0)),      # resident b
                ],
                out_specs=pl.BlockSpec((tm, N_pad), lambda i: (i, 0)),
            ),
            compiler_params=pltpu.CompilerParams(
                dimension_semantics=("parallel",),
            ),
            cost_estimate=cost,
        )(x, w_t, bias2d)
        return out[:B, :n_out]

    # ------------------------------------------------------------------ #
    # General tiled GEMM path.
    # ------------------------------------------------------------------ #
    # M tile: multiple of 8, modest over-pad for mid-size batches.
    if B <= 512:
        tm = _round_up(B, 8)
    elif B <= 2048:
        tm = 256
    else:
        tm = 512
    M_pad = _round_up(B, tm)
    m_blocks = M_pad // tm

    # Lane-dense tiles chosen as divisors of the (tightly) padded dims.
    tk = _largest_tile(K_pad, 1024)
    tn = _largest_tile(N_pad, 512)
    # v7x megacore: if M contributes only one parallel block, make sure the
    # parallel N axis has >= 2 blocks so both TensorCores get work
    # (costs nothing on single-TC v5e/v6e).
    if m_blocks == 1 and N_pad // tn < 2 and N_pad >= 256:
        tn = _largest_tile(N_pad, N_pad // 2)
    n_blocks = N_pad // tn
    k_blocks = K_pad // tk

    if (M_pad, K_pad) != x.shape:
        x = jnp.zeros((M_pad, K_pad), x.dtype).at[:B, :K].set(x)

    # GEMV-like (single M block) => weight-streaming bound: buffer deeper.
    deep_buffer = (m_blocks == 1) and (k_blocks * n_blocks >= 4)

    in_specs = [
        pl.BlockSpec((tm, tk), lambda i, j, k: (i, k)),   # x tile
        _weight_block_spec(tk, tn, deep_buffer),          # w tile (streamed)
        pl.BlockSpec((1, tn), lambda i, j, k: (0, j)),    # bias tile
    ]
    out_spec = pl.BlockSpec((tm, tn), lambda i, j, k: (i, j))

    if k_blocks == 1:
        # Single K step: no accumulator scratch, direct bias-added store.
        kernel = _linear_bias_kernel
        scratch = []
    else:
        kernel = _linear_acc_kernel
        scratch = [pltpu.VMEM((tm, tn), jnp.float32)]

    cost = pl.CostEstimate(
        flops=2 * M_pad * K_pad * N_pad,
        transcendentals=0,
        bytes_accessed=(
            in_itemsize * M_pad * K_pad * n_blocks     # x re-streamed per N tile
            + in_itemsize * K_pad * N_pad * m_blocks   # w re-streamed per M tile
            + out_itemsize * M_pad * N_pad
        ),
    )

    out = pl.pallas_call(
        kernel,
        out_shape=jax.ShapeDtypeStruct((M_pad, N_pad), out_dtype),
        grid_spec=pltpu.PrefetchScalarGridSpec(
            num_scalar_prefetch=0,
            grid=(m_blocks, n_blocks, k_blocks),
            in_specs=in_specs,
            out_specs=out_spec,
            scratch_shapes=scratch,
        ),
        compiler_params=pltpu.CompilerParams(
            dimension_semantics=("parallel", "parallel", "arbitrary"),
            # Above v5e's 16 MiB default, within v7x's 64 MiB physical VMEM.
            vmem_limit_bytes=32 * 1024 * 1024,
        ),
        cost_estimate=cost,
    )(x, w_t, bias2d)

    return out[:B, :n_out]


def init_params(key, dim_feature_tracklet, dim_feature_future, dtype=jnp.float32):
    """Xavier-uniform weight (like torch.nn.init.xavier_uniform_), zero bias."""
    fan_in, fan_out = dim_feature_tracklet, dim_feature_future
    limit = (6.0 / (fan_in + fan_out)) ** 0.5
    weight = jax.random.uniform(
        key, (dim_feature_future, dim_feature_tracklet),
        minval=-limit, maxval=limit, dtype=dtype)
    bias = jnp.zeros((dim_feature_future,), dtype=dtype)
    return weight, bias


if __name__ == "__main__":
    key = jax.random.PRNGKey(0)

    # ---- Test 1: actual model_singleLayer shape (tiny -> fast path) ----
    batch, seq, feat = 8, 8, 4
    dim_in, dim_out = seq * feat, 16           # dim_feature_tracklet=32, future=16
    k1, k2, k3 = jax.random.split(key, 3)
    story = jax.random.normal(k1, (batch, seq, feat), dtype=jnp.float32)
    weight, _ = init_params(k2, dim_in, dim_out)
    bias = 0.1 * jax.random.normal(k3, (dim_out,), dtype=jnp.float32)  # nonzero to test bias path
    w_t, b2d, n_out, k_in = prepare_params(weight, bias)
    out = single_layer_forward(story, w_t, b2d, n_out, k_in)
    jax.block_until_ready(out)
    ref = story.reshape(batch, -1) @ weight.T + bias
    assert out.shape == (batch, dim_out)
    assert jnp.allclose(out, ref, atol=1e-4, rtol=1e-4)

    # ---- Test 2: larger shape -> tiled path, multi-step K accumulator ----
    batch2, seq2, feat2 = 24, 40, 64           # K=2560 (K_pad=2560, tk=640 -> 4 K steps)
    dim_in2, dim_out2 = seq2 * feat2, 600      # N_pad=640, tn=128 -> 5 N tiles
    k4, k5, k6 = jax.random.split(k3, 3)
    story2 = jax.random.normal(k4, (batch2, seq2, feat2), dtype=jnp.float32)
    weight2, _ = init_params(k5, dim_in2, dim_out2)
    bias2 = 0.1 * jax.random.normal(k6, (dim_out2,), dtype=jnp.float32)
    w_t2, b2d2, n_out2, k_in2 = prepare_params(weight2, bias2)
    out2 = single_layer_forward(story2, w_t2, b2d2, n_out2, k_in2)
    jax.block_until_ready(out2)
    ref2 = (
        jnp.dot(story2.reshape(batch2, -1), weight2.T,
                precision=jax.lax.Precision.HIGHEST)
        + bias2
    )
    assert out2.shape == (batch2, dim_out2)
    assert jnp.allclose(out2, ref2, atol=2e-2, rtol=2e-2)

    # ---- Test 3: tiled path with a single K step (no-accumulator variant) ----
    batch3, seq3, feat3 = 16, 12, 64           # K=768 (K_pad=768, tk=768 -> 1 K step)
    dim_in3, dim_out3 = seq3 * feat3, 1000     # N_pad=1024 -> weight > fast-path budget
    k7, k8, k9 = jax.random.split(k6, 3)
    story3 = jax.random.normal(k7, (batch3, seq3, feat3), dtype=jnp.float32)
    weight3, _ = init_params(k8, dim_in3, dim_out3)
    bias3 = 0.1 * jax.random.normal(k9, (dim_out3,), dtype=jnp.float32)
    w_t3, b2d3, n_out3, k_in3 = prepare_params(weight3, bias3)
    out3 = single_layer_forward(story3, w_t3, b2d3, n_out3, k_in3)
    jax.block_until_ready(out3)
    ref3 = (
        jnp.dot(story3.reshape(batch3, -1), weight3.T,
                precision=jax.lax.Precision.HIGHEST)
        + bias3
    )
    assert out3.shape == (batch3, dim_out3)
    assert jnp.allclose(out3, ref3, atol=2e-2, rtol=2e-2)

    print("KERNEL_OK")
</pallas_src>

<mosaic_0001>
module attributes {stable_mosaic.version = 11 : i64} {
  func.func @_linear_bias_kernel(%arg0: i32, %arg1: memref<8x128xf32, #tpu.memory_space<vmem>>, %arg2: memref<128x128xf32, #tpu.memory_space<vmem>>, %arg3: memref<1x128xf32, #tpu.memory_space<vmem>>, %arg4: memref<8x128xf32, #tpu.memory_space<vmem>>) attributes {dimension_semantics = [#tpu.dimension_semantics<parallel>], iteration_bounds = array<i64: 1>, scalar_prefetch = 0 : i64, scratch_operands = 0 : i64, tpu.core_type = #tpu.core_type<tc>, window_params = [{transform_indices = @transform_0, window_bounds = array<i64: 8, 128>}, {pipeline_mode = #tpu.pipeline_mode<synchronous>, transform_indices = @transform_1, window_bounds = array<i64: 128, 128>}, {pipeline_mode = #tpu.pipeline_mode<synchronous>, transform_indices = @transform_2, window_bounds = array<i64: 1, 128>}, {transform_indices = @transform_3, window_bounds = array<i64: 8, 128>}]} {
    %c0 = arith.constant 0 : index
    %c0_0 = arith.constant 0 : index
    %0 = vector.load %arg1[%c0, %c0_0] : memref<8x128xf32, #tpu.memory_space<vmem>>, vector<8x128xf32>
    %c0_1 = arith.constant 0 : index
    %c0_2 = arith.constant 0 : index
    %1 = vector.load %arg2[%c0_1, %c0_2] : memref<128x128xf32, #tpu.memory_space<vmem>>, vector<128x128xf32>
    %cst = arith.constant dense<0.000000e+00> : vector<8x128xf32>
    %2 = tpu.matmul %0, %1, %cst {dimension_numbers = #tpu.dot_dimension_numbers<[1], [0], [0], [1], [0, 0, 1, 1], [], []>} : vector<8x128xf32>, vector<128x128xf32>, vector<8x128xf32> -> vector<8x128xf32>
    %c0_3 = arith.constant 0 : index
    %c0_4 = arith.constant 0 : index
    %3 = vector.load %arg3[%c0_3, %c0_4] : memref<1x128xf32, #tpu.memory_space<vmem>>, vector<1x128xf32>
    %4 = vector.broadcast %3 : vector<1x128xf32> to vector<8x128xf32>
    %5 = arith.addf %2, %4 : vector<8x128xf32>
    %c0_5 = arith.constant 0 : index
    %c0_6 = arith.constant 0 : index
    %6 = vector.load %arg4[%c0_5, %c0_6] : memref<8x128xf32, #tpu.memory_space<vmem>>, vector<8x128xf32>
    tpu.vector_store %arg4[%c0_5, %c0_6], %5 {strides = array<i32>} : memref<8x128xf32, #tpu.memory_space<vmem>>, vector<8x128xf32>,
    return
  }
  func.func @transform_0(%arg0: i32) -> (i32, i32) {
    %c0_i32 = arith.constant 0 : i32
    %c0_i32_0 = arith.constant 0 : i32
    return %arg0, %c0_i32 : i32, i32
  }
  func.func @transform_1(%arg0: i32) -> (i32, i32) {
    %c0_i32 = arith.constant 0 : i32
    %c0_i32_0 = arith.constant 0 : i32
    %c0_i32_1 = arith.constant 0 : i32
    return %c0_i32, %c0_i32_0 : i32, i32
  }
  func.func @transform_2(%arg0: i32) -> (i32, i32) {
    %c0_i32 = arith.constant 0 : i32
    %c0_i32_0 = arith.constant 0 : i32
    %c0_i32_1 = arith.constant 0 : i32
    return %c0_i32, %c0_i32_0 : i32, i32
  }
  func.func @transform_3(%arg0: i32) -> (i32, i32) {
    %c0_i32 = arith.constant 0 : i32
    %c0_i32_0 = arith.constant 0 : i32
    return %arg0, %c0_i32 : i32, i32
  }
}

</mosaic_0001>

<bundles_post_ra>
// kernel: single_layer_forward.1
= control target key start
LH: loop header
LB: loop body
LE: loop exit
PB: predicated region body
PF: predicated region fallthrough
CT: control target
= control target key end

     0   :  { %v229_v3 = vmov 0.0|0.0   ;;  %vm230_vm0 = vmmov 0   ;;  %v231_v6 = vmov 0.0   ;;  %s319_s0 = inlined_call_operand.vmem [shape: f32[8,128], index: 0, kind: input, shape index: {}]   ;;  %s320_s1 = inlined_call_operand.vmem [shape: f32[128,128], index: 1, kind: input, shape index: {}]   ;;  %s321_s2 = inlined_call_operand.vmem [shape: f32[1,128], index: 2, kind: input, shape index: {}]   ;;  %s322_s3 = inlined_call_operand.hbm [shape: f32[8,128], index: 3, kind: output, shape index: {}]  }
   0x1   :  { %v16_v0 = vld [vmem:[%s320_s1] sm:$0xff]  ;;  %v17_v1 = vld [vmem:[%s320_s1 + $0x8] sm:$0xff]  ;;  %v18_v2 = vld [vmem:[%s320_s1 + $0x10] sm:$0xff]  ;;  %177 = vmatprep.subr.bf16.mxu0 %v229_v3  ;;  %174 = vmatprep.mubr.msk.f32.mxu0 %vm230_vm0, %v231_v6 }
   0x2   :  { %v178_v4 = vpack.c.bf16 %v17_v1, %v16_v0  ;;  %v19_v5 = vld [vmem:[%s320_s1 + $0x18] sm:$0xff]  ;;  %v20_v8 = vld [vmem:[%s320_s1 + $0x20] sm:$0xff]  ;;  %v21_v9 = vld [vmem:[%s320_s1 + $0x28] sm:$0xff] }
   0x3   :  { %v181_v7 = vpack.c.bf16 %v19_v5, %v18_v2 }
   0x4   :  { %179 = vmatpush3.bf16.msra.mxu0 %v178_v4 }
   0x5   :  { %180 = vmatprep.subr.bf16.mxu0 %v229_v3 }
   0x6   :  { %8 = vsyncpa [#allocation3], 0  ;;  %v184_v10 = vpack.c.bf16 %v21_v9, %v20_v8  ;;  %v22_v11 = vld [vmem:[%s320_s1 + $0x30] sm:$0xff]  ;;  %v23_v12 = vld [vmem:[%s320_s1 + $0x38] sm:$0xff]  ;;  %s232_s21 = smov [#allocation2]  }
   0x7   :  { %v187_v13 = vpack.c.bf16 %v23_v12, %v22_v11  ;;  %v24_v14 = vld [vmem:[%s320_s1 + $0x40] sm:$0xff]  ;;  %v25_v15 = vld [vmem:[%s320_s1 + $0x48] sm:$0xff]  ;;  %v26_v17 = vld [vmem:[%s320_s1 + $0x50] sm:$0xff]  ;;  %s116_s22 = sshll.u32 %s232_s21, 4  ;;  %s117_s22 = int_to_ptr.vmem [resolvable:$true] %s116_s22 }
   0x8   :  { %182 = vmatpush3.bf16.msra.mxu0 %v181_v7  ;;  %v190_v16 = vpack.c.bf16 %v25_v15, %v24_v14  ;;  %v27_v18 = vld [vmem:[%s320_s1 + $0x58] sm:$0xff]  ;;  %v28_v20 = vld [vmem:[%s320_s1 + $0x60] sm:$0xff]  ;;  %v29_v21 = vld [vmem:[%s320_s1 + $0x68] sm:$0xff]  ;;  %p210_p1 = scmp.lt.s32.totalorder %s117_s22, %s117_s22 }
   0x9   :  { %183 = vmatprep.subr.bf16.mxu0 %v229_v3  ;;  %v193_v19 = vpack.c.bf16 %v27_v18, %v26_v17  ;;  %v196_v22 = vpack.c.bf16 %v29_v21, %v28_v20  ;;  %v30_v23 = vld [vmem:[%s320_s1 + $0x70] sm:$0xff]  ;;  %v31_v24 = vld [vmem:[%s320_s1 + $0x78] sm:$0xff]  ;;  %v15_v26 = vld [vmem:[%s319_s0] sm:$0xff]  ;;  %s205_s1 = scalar_lea.vmem %s117_s22, 128 }
   0xa   :  { %v199_v25 = vpack.c.bf16 %v31_v24, %v30_v23  ;;  %v124_v27 = vld [vmem:[%s321_s2] ss:$0 sm:$0xff]  ;;  %p206_p0 = scmp.ne.s32.totalorder %s117_s22, %s205_s1  ;;  %p211_p2 = scmp.lt.s32.totalorder %s205_s1, %s205_s1 }
   0xc   :  { %185 = vmatpush3.bf16.msra.mxu0 %v184_v10  ;;  %p212_p3 = por %p211_p2, %p210_p1 }
   0xd   :  { %186 = vmatprep.subr.bf16.mxu0 %v229_v3 }
   0xe   :  { %p213_p4 = pnand %p212_p3, %p206_p0 }
  0x10   :  { %188 = vmatpush3.bf16.msra.mxu0 %v187_v13 }
  0x11   :  { %189 = vmatprep.subr.bf16.mxu0 %v229_v3 }
  0x14   :  { %191 = vmatpush3.bf16.msra.mxu0 %v190_v16 }
  0x15   :  { %192 = vmatprep.subr.bf16.mxu0 %v229_v3 }
  0x18   :  { %194 = vmatpush3.bf16.msra.mxu0 %v193_v19 }
  0x19   :  { %195 = vmatprep.subr.bf16.mxu0 %v229_v3 }
  0x1c   :  { %197 = vmatpush3.bf16.msra.mxu0 %v196_v22 }
  0x1d   :  { %198 = vmatprep.subr.bf16.mxu0 %v229_v3 }
  0x20   :  { %200 = vmatpush3.bf16.msra.mxu0 %v199_v25 }
  0x23   :  { %175 = vmatmul.mubr.f32.vlgmr.msra.gmra.mrb[0].mxu0 %v15_v26 }
  0xf6   :  { %v105_v28 = vpop.f32.mrb[0].mxu0 }
  0xf7   :  { %v106_v29 = vadd.f32 %v124_v27, %v105_v28  ;;  %v176_v30 = vpop.f32.mrb[1].mxu0 }
  0xf9   :  { %109 = vst [vmem:[#allocation2] sm:$0xff] %v106_v29 }
  0xfa   :  { %216 = shalt.err (!%p213_p4)
}
  0xfb   :  { %s217_s24 = scalar_lea.hbm %s322_s3, 128 }
  0xfc   :  { %p218_p5 = scmp.ne.s32.totalorder %s322_s3, %s217_s24  ;;  %p221_p6 = scmp.lt.u32.totalorder %s217_s24, %s322_s3 }
  0xfe   :  { %p223_p7 = pnand %p221_p6, %p218_p5 }
 0x100   :  { %226 = shalt.err (!%p223_p7)
}
 0x101   :  { %119 = dma.vmem_to_hbm [thread:$0]  %s117_s22, 128, %s322_s3, [#allocation3]  }
 0x102   :  { %227 = dma.done.wait [#allocation3], 128  }
 0x103   :  { %228 = vsyncadd [#allocation3], 4294967168 }
 0x104   :  { %123 = vsyncpa [#allocation3], 1 }

</bundles_post_ra>
